<compile_context>
chip_gen: v7x
topology: tpu7x:2x2x1
jax: 0.10.0
libtpu: 0.0.40
codegen_flags: <defaults>
</compile_context>

<pallas_src>
import jax
import jax.numpy as jnp
from jax.experimental import pallas as pl
from jax.experimental.pallas import tpu as pltpu


def _round_up(x, m):
    return ((x + m - 1) // m) * m


# ---------------------------------------------------------------------------
# Kernel:  leaky_relu(x @ W1' + shift', 0.2) @ W2 + b2
#   (eval-mode BatchNorm1d + Linear1 bias folded into W1'/shift' on the host,
#    once, at parameter-preparation time)
# ---------------------------------------------------------------------------
def _downsample_kernel(x_ref, w1_ref, shift_ref, w2_ref, b2_ref, o_ref):
    # x arrives as f32; cast in-register (VPU cast hides under the MXU) so the
    # activation stream is 4 B/elem of HBM traffic instead of a separate
    # host-side cast+pad pass.
    x = x_ref[...].astype(w1_ref.dtype)
    h = jnp.dot(x, w1_ref[...], preferred_element_type=jnp.float32)
    h = h + shift_ref[...]                   # folded Linear1 bias + BatchNorm
    h = jnp.maximum(h, 0.2 * h)              # LeakyReLU(0.2) in f32 (mul + max)
    h = h.astype(w2_ref.dtype)               # downcast only for the 2nd matmul
    out = jnp.dot(h, w2_ref[...], preferred_element_type=jnp.float32)
    out = out + b2_ref[...]
    o_ref[...] = out.astype(o_ref.dtype)


# ---------------------------------------------------------------------------
# One-time parameter preparation (hoisted out of the per-call path).
# ---------------------------------------------------------------------------
def prepare_feature2headpose_params(params, *, use_bf16=True, eps=1e-5):
    """Fold eval-mode BatchNorm1d into Linear1, pad to lane-dense shapes, cast.

    Weight layout is (in_features, out_features); transpose PyTorch Linear
    weights ((out, in)) when loading a real checkpoint.
    Eval-mode fold (running stats, eps=1e-5) only — training-mode batch stats
    are not supported here.
    """
    w1 = params["w1"].astype(jnp.float32)
    b1 = params["b1"].astype(jnp.float32)
    w2 = params["w2"].astype(jnp.float32)
    b2 = params["b2"].astype(jnp.float32)
    gamma = params["bn_gamma"].astype(jnp.float32)
    beta = params["bn_beta"].astype(jnp.float32)
    mean = params["bn_running_mean"].astype(jnp.float32)
    var = params["bn_running_var"].astype(jnp.float32)

    # scale = gamma / sqrt(var+eps); W1' = W1*scale; shift = (b1-mean)*scale+beta
    scale = gamma * jax.lax.rsqrt(var + eps)
    w1_folded = w1 * scale[None, :]
    shift = (b1 - mean) * scale + beta

    K, D = w1.shape
    K_pad = _round_up(K, 128)
    D_pad = _round_up(D, 128)
    mm_dtype = jnp.bfloat16 if use_bf16 else jnp.float32

    def pad_cast(a, rows, cols, dtype):
        a = a.astype(dtype)
        if a.shape == (rows, cols):
            return a                                   # aligned: no extra copy
        return jnp.zeros((rows, cols), dtype).at[:a.shape[0], :a.shape[1]].set(a)

    return dict(
        K=K, D=D, K_pad=K_pad, D_pad=D_pad, mm_dtype=mm_dtype,
        w1p=pad_cast(w1_folded, K_pad, D_pad, mm_dtype),
        w2p=pad_cast(w2, D_pad, D_pad, mm_dtype),
        shiftp=pad_cast(shift[None, :], 1, D_pad, jnp.float32),
        b2p=pad_cast(b2[None, :], 1, D_pad, jnp.float32),
        # Unpadded f32 copies for the small-problem XLA fallback.
        w1_folded=w1_folded, shift=shift, w2=w2, b2=b2,
    )


# ---------------------------------------------------------------------------
# Fused  leaky_relu(x @ W1' + shift', 0.2) @ W2 + b2
# ---------------------------------------------------------------------------
def audio_downsample_pallas(x2d, prep, *, tm=512, out_dtype=jnp.float32,
                            use_pallas=None):
    M, K = x2d.shape
    assert K == prep["K"], (K, prep["K"])
    D, K_pad, D_pad = prep["D"], prep["K_pad"], prep["D_pad"]

    if use_pallas is None:
        # Below a few MFLOP the fixed pallas launch + pad/slice overhead
        # dominates; let XLA's fused dot handle it.
        use_pallas = (2 * M * K * D) >= (1 << 23)

    if not use_pallas:
        h = x2d @ prep["w1_folded"] + prep["shift"]
        h = jnp.maximum(h, 0.2 * h)
        return (h @ prep["w2"] + prep["b2"]).astype(out_dtype)

    # Row tile: multiple of 8, large enough to amortize ~0.35us per-grid-step
    # overhead, but clamped so there are >= 2 grid steps whenever M allows
    # (megacore sharding on v7x needs at least 2 parallel steps).
    tm = max(8, min(tm, _round_up(M, 8)))
    if _round_up(M, tm) // tm < 2 and M > 8:
        tm = _round_up(pl.cdiv(M, 2), 8)
    M_pad = _round_up(M, tm)

    # x stays f32 (cast happens in-kernel); pad only when actually unaligned.
    xp = x2d
    if (M_pad, K_pad) != (M, K):
        xp = jnp.zeros((M_pad, K_pad), x2d.dtype).at[:M, :K].set(x2d)

    it = jnp.dtype(prep["mm_dtype"]).itemsize
    out_it = jnp.dtype(out_dtype).itemsize
    # VMEM budget: double-buffered f32 x tiles + out tiles, weights counted
    # twice (the pipeline may double-buffer even grid-constant blocks), plus
    # the f32/bf16 activation intermediates materialized per tile. Capped at
    # 48 MiB to keep headroom on v7x's 64 MiB per-TC VMEM.
    vmem_need = (2 * tm * K_pad * 4
                 + 2 * tm * D_pad * out_it
                 + 2 * ((K_pad + D_pad) * D_pad * it + 2 * D_pad * 4)
                 + tm * D_pad * (4 + it)      # f32 h + bf16 h
                 + tm * K_pad * it)           # bf16 cast of the x tile
    vmem_limit = int(min(max(int(vmem_need * 1.3), 32 * 1024 * 1024),
                         48 * 1024 * 1024))

    full = lambda shape: pl.BlockSpec(shape, lambda i: (0, 0))
    out = pl.pallas_call(
        _downsample_kernel,
        out_shape=jax.ShapeDtypeStruct((M_pad, D_pad), out_dtype),
        grid_spec=pltpu.PrefetchScalarGridSpec(
            num_scalar_prefetch=0,
            grid=(M_pad // tm,),
            in_specs=[
                pl.BlockSpec((tm, K_pad), lambda i: (i, 0)),  # streamed f32 rows
                full((K_pad, D_pad)),                         # W1 (BN-folded)
                full((1, D_pad)),                             # fused bias/BN shift
                full((D_pad, D_pad)),                         # W2
                full((1, D_pad)),                             # b2
            ],
            out_specs=pl.BlockSpec((tm, D_pad), lambda i: (i, 0)),
        ),
        compiler_params=pltpu.CompilerParams(
            dimension_semantics=("parallel",),
            vmem_limit_bytes=vmem_limit),
    )(xp, prep["w1p"], prep["shiftp"], prep["w2p"], prep["b2p"])

    if (M_pad, D_pad) != (M, D):
        out = out[:M, :D]
    return out


def feature2headpose_audio_features(audio_features, prep, *, tm=512,
                                    out_dtype=jnp.float32, use_pallas=None):
    """audio_downsample(reshape(-1, N*2)).reshape(BS, L, -1).transpose(1, 2)."""
    BS, L, N = audio_features.shape
    x2d = audio_features.reshape(-1, N * 2)          # (BS*L/2, 2*in_d)
    y2d = audio_downsample_pallas(x2d, prep, tm=tm, out_dtype=out_dtype,
                                  use_pallas=use_pallas)
    y = y2d.reshape(BS, L, -1)                       # (BS, L, in_d/2)
    # TODO(synk): this transpose is a full extra HBM pass; fuse it into the
    # Wavenet's first conv (dimension_numbers) once that module is available.
    return jnp.transpose(y, (0, 2, 1))               # (BS, in_d/2, L)


def _reference(audio_features, params):
    BS, L, N = audio_features.shape
    x = audio_features.reshape(-1, N * 2)
    h = x @ params["w1"] + params["b1"]
    eps = 1e-5
    h = ((h - params["bn_running_mean"]) /
         jnp.sqrt(params["bn_running_var"] + eps)) * params["bn_gamma"] + params["bn_beta"]
    h = jnp.where(h > 0, h, 0.2 * h)
    y = h @ params["w2"] + params["b2"]
    return jnp.transpose(y.reshape(BS, L, -1), (0, 2, 1))


if __name__ == "__main__":
    key = jax.random.PRNGKey(0)
    in_d = 128               # config['in_d'] (small stand-in for 512)
    BS, L, N = 2, 16, in_d   # audio_features: (BS, L, N), N == in_d

    ks = jax.random.split(key, 8)
    params = {
        "w1": jax.random.normal(ks[0], (2 * in_d, in_d), jnp.float32) * 0.05,
        "b1": jax.random.normal(ks[1], (in_d,), jnp.float32) * 0.05,
        "bn_gamma": 1.0 + 0.1 * jax.random.normal(ks[2], (in_d,), jnp.float32),
        "bn_beta": 0.1 * jax.random.normal(ks[3], (in_d,), jnp.float32),
        "bn_running_mean": 0.01 * jax.random.normal(ks[4], (in_d,), jnp.float32),
        "bn_running_var": jnp.abs(
            1.0 + 0.05 * jax.random.normal(ks[5], (in_d,), jnp.float32)),
        "w2": jax.random.normal(ks[6], (in_d, in_d), jnp.float32) * 0.05,
        "b2": jax.random.normal(ks[7], (in_d,), jnp.float32) * 0.05,
    }

    audio_features = jax.random.normal(key, (BS, L, N), jnp.float32)

    # One-time weight fold/pad/cast (constant across the recursive decode).
    prep = prepare_feature2headpose_params(params, use_bf16=True)

    # Force the Pallas path at this demo size so the kernel actually executes.
    run = jax.jit(lambda a: feature2headpose_audio_features(
        a, prep, tm=512, out_dtype=jnp.float32, use_pallas=True))
    out = jax.block_until_ready(run(audio_features))

    ref = _reference(audio_features, params)
    assert out.shape == (BS, in_d // 2, L), out.shape
    # bf16 matmuls with f32 accumulation: relaxed tolerance vs f32 reference.
    assert jnp.allclose(out, ref, atol=5e-2, rtol=5e-2), float(
        jnp.max(jnp.abs(out - ref)))

    # Also sanity-check the small-problem XLA fallback path agrees.
    out_fb = feature2headpose_audio_features(audio_features, prep,
                                             use_pallas=False)
    assert jnp.allclose(out_fb, ref, atol=5e-3, rtol=5e-3)

    print("KERNEL_OK")
</pallas_src>

<mosaic_0001>
module attributes {stable_mosaic.version = 11 : i64} {
  func.func @_downsample_kernel(%arg0: i32, %arg1: memref<8x256xf32, #tpu.memory_space<vmem>>, %arg2: memref<256x128xbf16, #tpu.memory_space<vmem>>, %arg3: memref<1x128xf32, #tpu.memory_space<vmem>>, %arg4: memref<128x128xbf16, #tpu.memory_space<vmem>>, %arg5: memref<1x128xf32, #tpu.memory_space<vmem>>, %arg6: memref<8x128xf32, #tpu.memory_space<vmem>>) attributes {dimension_semantics = [#tpu.dimension_semantics<parallel>], iteration_bounds = array<i64: 2>, scalar_prefetch = 0 : i64, scratch_operands = 0 : i64, tpu.core_type = #tpu.core_type<tc>, window_params = [{transform_indices = @transform_0, window_bounds = array<i64: 8, 256>}, {pipeline_mode = #tpu.pipeline_mode<synchronous>, transform_indices = @transform_1, window_bounds = array<i64: 256, 128>}, {pipeline_mode = #tpu.pipeline_mode<synchronous>, transform_indices = @transform_2, window_bounds = array<i64: 1, 128>}, {pipeline_mode = #tpu.pipeline_mode<synchronous>, transform_indices = @transform_3, window_bounds = array<i64: 128, 128>}, {pipeline_mode = #tpu.pipeline_mode<synchronous>, transform_indices = @transform_4, window_bounds = array<i64: 1, 128>}, {transform_indices = @transform_5, window_bounds = array<i64: 8, 128>}]} {
    %c0 = arith.constant 0 : index
    %c0_0 = arith.constant 0 : index
    %0 = vector.load %arg1[%c0, %c0_0] : memref<8x256xf32, #tpu.memory_space<vmem>>, vector<8x256xf32>
    %1 = arith.truncf %0 : vector<8x256xf32> to vector<8x256xbf16>
    %c0_1 = arith.constant 0 : index
    %c0_2 = arith.constant 0 : index
    %2 = vector.load %arg2[%c0_1, %c0_2] : memref<256x128xbf16, #tpu.memory_space<vmem>>, vector<256x128xbf16>
    %cst = arith.constant dense<0.000000e+00> : vector<8x128xf32>
    %3 = tpu.matmul %1, %2, %cst {dimension_numbers = #tpu.dot_dimension_numbers<[1], [0], [0], [1], [0, 0, 1, 1], [], []>} : vector<8x256xbf16>, vector<256x128xbf16>, vector<8x128xf32> -> vector<8x128xf32>
    %c0_3 = arith.constant 0 : index
    %c0_4 = arith.constant 0 : index
    %4 = vector.load %arg3[%c0_3, %c0_4] : memref<1x128xf32, #tpu.memory_space<vmem>>, vector<1x128xf32>
    %5 = vector.broadcast %4 : vector<1x128xf32> to vector<8x128xf32>
    %6 = arith.addf %3, %5 : vector<8x128xf32>
    %cst_5 = arith.constant 2.000000e-01 : f32
    %7 = vector.broadcast %cst_5 : f32 to vector<8x128xf32>
    %8 = arith.mulf %7, %6 : vector<8x128xf32>
    %9 = arith.maximumf %6, %8 : vector<8x128xf32>
    %10 = arith.truncf %9 : vector<8x128xf32> to vector<8x128xbf16>
    %c0_6 = arith.constant 0 : index
    %c0_7 = arith.constant 0 : index
    %11 = vector.load %arg4[%c0_6, %c0_7] : memref<128x128xbf16, #tpu.memory_space<vmem>>, vector<128x128xbf16>
    %cst_8 = arith.constant dense<0.000000e+00> : vector<8x128xf32>
    %12 = tpu.matmul %10, %11, %cst_8 {dimension_numbers = #tpu.dot_dimension_numbers<[1], [0], [0], [1], [0, 0, 1, 1], [], []>} : vector<8x128xbf16>, vector<128x128xbf16>, vector<8x128xf32> -> vector<8x128xf32>
    %c0_9 = arith.constant 0 : index
    %c0_10 = arith.constant 0 : index
    %13 = vector.load %arg5[%c0_9, %c0_10] : memref<1x128xf32, #tpu.memory_space<vmem>>, vector<1x128xf32>
    %14 = vector.broadcast %13 : vector<1x128xf32> to vector<8x128xf32>
    %15 = arith.addf %12, %14 : vector<8x128xf32>
    %c0_11 = arith.constant 0 : index
    %c0_12 = arith.constant 0 : index
    %16 = vector.load %arg6[%c0_11, %c0_12] : memref<8x128xf32, #tpu.memory_space<vmem>>, vector<8x128xf32>
    tpu.vector_store %arg6[%c0_11, %c0_12], %15 {strides = array<i32>} : memref<8x128xf32, #tpu.memory_space<vmem>>, vector<8x128xf32>,
    return
  }
  func.func @transform_0(%arg0: i32) -> (i32, i32) {
    %c0_i32 = arith.constant 0 : i32
    %c0_i32_0 = arith.constant 0 : i32
    return %arg0, %c0_i32 : i32, i32
  }
  func.func @transform_1(%arg0: i32) -> (i32, i32) {
    %c0_i32 = arith.constant 0 : i32
    %c0_i32_0 = arith.constant 0 : i32
    %c0_i32_1 = arith.constant 0 : i32
    return %c0_i32, %c0_i32_0 : i32, i32
  }
  func.func @transform_2(%arg0: i32) -> (i32, i32) {
    %c0_i32 = arith.constant 0 : i32
    %c0_i32_0 = arith.constant 0 : i32
    %c0_i32_1 = arith.constant 0 : i32
    return %c0_i32, %c0_i32_0 : i32, i32
  }
  func.func @transform_3(%arg0: i32) -> (i32, i32) {
    %c0_i32 = arith.constant 0 : i32
    %c0_i32_0 = arith.constant 0 : i32
    %c0_i32_1 = arith.constant 0 : i32
    return %c0_i32, %c0_i32_0 : i32, i32
  }
  func.func @transform_4(%arg0: i32) -> (i32, i32) {
    %c0_i32 = arith.constant 0 : i32
    %c0_i32_0 = arith.constant 0 : i32
    %c0_i32_1 = arith.constant 0 : i32
    return %c0_i32, %c0_i32_0 : i32, i32
  }
  func.func @transform_5(%arg0: i32) -> (i32, i32) {
    %c0_i32 = arith.constant 0 : i32
    %c0_i32_0 = arith.constant 0 : i32
    return %arg0, %c0_i32 : i32, i32
  }
}

</mosaic_0001>

<bundles_post_ra>
// kernel: _lambda_.1
= control target key start
LH: loop header
LB: loop body
LE: loop exit
PB: predicated region body
PF: predicated region fallthrough
CT: control target
= control target key end

     0   :  { %10 = vsyncpa [#allocation3], 0  ;;  %s810_s18 = smov 0   ;;  %s909_s0 = inlined_call_operand.vmem [shape: f32[16,256], index: 0, kind: input, shape index: {}]   ;;  %s910_s1 = inlined_call_operand.hbm [shape: bf16[256,128], index: 1, kind: input, shape index: {}]   ;;  %s911_s2 = inlined_call_operand.vmem [shape: f32[1,128], index: 2, kind: input, shape index: {}]   ;;  %s912_s3 = inlined_call_operand.vmem [shape: bf16[128,128], index: 3, kind: input, shape index: {}]   ;;  %s913_s4 = inlined_call_operand.vmem [shape: f32[1,128], index: 4, kind: input, shape index: {}]   ;;  %s914_s5 = inlined_call_operand.vmem [shape: f32[16,128], index: 5, kind: output, shape index: {}]  }
   0x1 LB: > { %s816_s19 = sadd.s32 4294967295, %s773_s18   ;;  %p600_p0 = scmp.ge.s32.totalorder %s773_s18, 1  ;;  %s773_s18 = sphi %s810_s18, %s16_s18  }
   0x2   : > { %p157_p1 = scmp.lt.s32.totalorder %s773_s18, 3  ;;  %s775_s20 = smov [#allocation2]  }
   0x3   : > { %s169_s21 = sshll.u32 %s775_s20, 4  ;;  %p915_p3 = scmp.eq.s32.totalorder %s816_s19, 0  ;;  %s170_s21 = int_to_ptr.vmem [resolvable:$true] %s169_s21 }
   0x4   : > { %p820_p2 = pnand %p600_p0, %p157_p1  ;;  %s735_s26 = scalar_lea.hbm %s910_s1, 2048 }
   0x5   : > { %p736_p6 = scmp.ne.s32.totalorder %s910_s1, %s735_s26  ;;  %p742_p10 = scmp.lt.u32.totalorder %s735_s26, %s910_s1 }
   0x6   : > { %s917_s22 = scalar_select %p820_p2, 1, 0 }
   0x7   : > { %p692_p4 = pneg %p820_p2 }
   0x9   : > { %p829_p5 = pnand %p915_p3, %p692_p4 }
   0xb   : > { %p737_p7 = pneg %p829_p5 }
   0xd   : > { %p738_p8 = pnand %p737_p7, %p736_p6 }
   0xf   : > { %p739_p9 = pneg %p738_p8 }
  0x11   : > { %p744_p11 = pnand %p742_p10, %p739_p9 }
  0x13   : > { %747 = shalt.err (!%p744_p11)
}
  0x14   : > { %s748_s6 = scalar_lea.vmem %s170_s21, 2048  ;;  %p756_p1 = scmp.lt.s32.totalorder %s170_s21, %s170_s21 }
  0x15   : > { %p749_p12 = scmp.ne.s32.totalorder %s170_s21, %s748_s6  ;;  %p757_p4 = scmp.lt.s32.totalorder %s748_s6, %s748_s6 }
  0x17   : > { %p751_p13 = pnand %p749_p12, %p737_p7  ;;  %p758_p3 = por %p757_p4, %p756_p1 }
  0x19   : > { %p752_p0 = pneg %p751_p13 }
  0x1b   : > { %p759_p2 = pnand %p758_p3, %p752_p0 }
  0x1d   : > { %762 = shalt.err (!%p759_p2)
}
  0x1e   : > { %s776_s7 = smov 64   ;;  %s777_s8 = smov 4  }
  0x1f   : > { %695 = dma.hbm_to_vmem [thread:$0]  (!%p829_p5), %s910_s1, 2048, %s170_s21, [#allocation3], %s776_s7, %s776_s7, %s777_s8  }
  0x20   : > { %p919_p6 = scmp.ne.s32.totalorder %s917_s22, 0 }
  0x21   : > { %p920_p8 = scmp.eq.s32.totalorder (!%p919_p6), %s816_s19, 0 }
  0x22   : > { %202 = sbr.rel (%p919_p6) target bundleno = 513 (0x201), region = 40 }
  0x29   : > { %768 = dma.done.wait (%p920_p8), [#allocation3], 2048   ;;  %p921_p7 = pmov %p920_p8 }
  0x2a   : > { %v778_v0 = vmov 0.0   ;;  %v711_v1 = vld [vmem:[#allocation2 + $0x40] sm:$0xff]   ;;  %v713_v3 = vld [vmem:[#allocation2 + $0x48] sm:$0xff]   ;;  %p229_p2 = scmp.lt.s32.totalorder %s816_s19, 1  ;;  %v715_v5 = vld [vmem:[#allocation2 + $0x50] sm:$0xff]   ;;  %vm779_vm0 = vmmov 0  }
  0x2b   : > { %770 = vsyncadd (%p921_p7), [#allocation3], 4294965248  ;;  %668 = vmatprep.subr.bf16.mxu1 %v778_v0  ;;  %v712_v2 = vld [vmem:[#allocation2] sm:$0xff]   ;;  %637 = vmatprep.subr.bf16.mxu0 %v711_v1  ;;  %v714_v4 = vld [vmem:[#allocation2 + $0x8] sm:$0xff]  }
  0x2c   : > { %638 = vmatpush3.bf16.msra.mxu0 %v712_v2  ;;  %s923_s19 = smov (!%p229_p2, %s816_s19), 1  ;;  %v716_v6 = vld [vmem:[#allocation2 + $0x10] sm:$0xff]   ;;  %v717_v7 = vld [vmem:[#allocation2 + $0x58] sm:$0xff]   ;;  %v719_v9 = vld [vmem:[#allocation2 + $0x60] sm:$0xff]   ;;  %684 = vmatprep.mubr.msk.bf16.mxu1 %vm779_vm0, %v778_v0 }
  0x2d   : > { %639 = vmatprep.subr.bf16.mxu0 %v713_v3  ;;  %s636_s11 = sshll.u32 %s923_s19, 4  ;;  %v718_v8 = vld [vmem:[#allocation2 + $0x18] sm:$0xff]   ;;  %v720_v10 = vld [vmem:[#allocation2 + $0x20] sm:$0xff]   ;;  %v721_v11 = vld [vmem:[#allocation2 + $0x68] sm:$0xff]   ;;  %s607_s10 = sshll.u32 %s923_s19, 3 }
  0x2e   : > { %s233_s14 = scalar_lea.vmem %s909_s0, %s636_s11  ;;  %v727_v14 = vld [vmem:[%s912_s3] sm:$0xff]   ;;  %v722_v15 = vld [vmem:[#allocation2 + $0x28] sm:$0xff]   ;;  %v723_v16 = vld [vmem:[#allocation2 + $0x70] sm:$0xff]   ;;  %s237_s15 = scalar_lea.vmem %s914_s5, %s607_s10 }
  0x2f   : > { %v240_v12 = vld [vmem:[%s233_s14 + $0x8] sm:$0xff]  ;;  %669 = vmatpush3.bf16.msra.mxu1 %v727_v14  ;;  %v724_v18 = vld [vmem:[#allocation2 + $0x30] sm:$0xff]   ;;  %v725_v19 = vld [vmem:[#allocation2 + $0x78] sm:$0xff]  }
  0x30   : > { %640 = vmatpush3.bf16.msra.mxu0 %v714_v4  ;;  %v242_v13 = vpack.c.bf16 %v240_v12, %v240_v12  ;;  %v728_v17 = vld [vmem:[%s912_s3 + $0x8] sm:$0xff]   ;;  %670 = vmatprep.subr.bf16.mxu1 %v778_v0  ;;  %v729_v20 = vld [vmem:[%s912_s3 + $0x10] sm:$0xff]   ;;  %v726_v21 = vld [vmem:[#allocation2 + $0x38] sm:$0xff]  }
  0x31   : > { %641 = vmatprep.subr.bf16.mxu0 %v715_v5  ;;  %v239_v22 = vld [vmem:[%s233_s14] sm:$0xff]  ;;  %v730_v23 = vld [vmem:[%s912_s3 + $0x18] sm:$0xff]   ;;  %v732_v26 = vld [vmem:[%s912_s3 + $0x28] sm:$0xff]  }
  0x32   : > { %410 = vmatprep.mubr.bf16.mxu0 %v242_v13  ;;  %v241_v24 = vpack.c.bf16 %v239_v22, %v239_v22  ;;  %v731_v25 = vld [vmem:[%s912_s3 + $0x20] sm:$0xff]   ;;  %v733_v27 = vld [vmem:[%s912_s3 + $0x30] sm:$0xff]   ;;  %v734_v28 = vld [vmem:[%s912_s3 + $0x38] sm:$0xff]  }
  0x33   : > { %671 = vmatpush3.bf16.msra.mxu1 %v728_v17  ;;  %v608_v30 = vld [vmem:[%s911_s2] ss:$0 sm:$0xff] }
  0x34   : > { %642 = vmatpush3.bf16.msra.mxu0 %v716_v6  ;;  %672 = vmatprep.subr.bf16.mxu1 %v778_v0  ;;  %v625_v39 = vld [vmem:[%s913_s4] ss:$0 sm:$0xff] }
  0x35   : > { %643 = vmatprep.subr.bf16.mxu0 %v717_v7 }
  0x37   : > { %673 = vmatpush3.bf16.msra.mxu1 %v729_v20 }
  0x38   : > { %644 = vmatpush3.bf16.msra.mxu0 %v718_v8  ;;  %674 = vmatprep.subr.bf16.mxu1 %v778_v0 }
  0x39   : > { %645 = vmatprep.subr.bf16.mxu0 %v719_v9 }
  0x3b   : > { %675 = vmatpush3.bf16.msra.mxu1 %v730_v23 }
  0x3c   : > { %646 = vmatpush3.bf16.msra.mxu0 %v720_v10  ;;  %676 = vmatprep.subr.bf16.mxu1 %v778_v0 }
  0x3d   : > { %647 = vmatprep.subr.bf16.mxu0 %v721_v11 }
  0x3f   : > { %677 = vmatpush3.bf16.msra.mxu1 %v731_v25 }
  0x40   : > { %648 = vmatpush3.bf16.msra.mxu0 %v722_v15  ;;  %678 = vmatprep.subr.bf16.mxu1 %v778_v0 }
  0x41   : > { %649 = vmatprep.subr.bf16.mxu0 %v723_v16 }
  0x43   : > { %679 = vmatpush3.bf16.msra.mxu1 %v732_v26 }
  0x44   : > { %650 = vmatpush3.bf16.msra.mxu0 %v724_v18  ;;  %680 = vmatprep.subr.bf16.mxu1 %v778_v0 }
  0x45   : > { %651 = vmatprep.subr.bf16.mxu0 %v725_v19 }
  0x47   : > { %681 = vmatpush3.bf16.msra.mxu1 %v733_v27 }
  0x48   : > { %652 = vmatpush3.bf16.msra.mxu0 %v726_v21  ;;  %682 = vmatprep.subr.bf16.mxu1 %v778_v0 }
  0x4b   : > { %411 = vmatmul.mubr.bf16.vlgmr.msra.gmra.mrb[0].mxu0 %v241_v24  ;;  %683 = vmatpush3.bf16.msra.mxu1 %v734_v28 }
 0x11e   : > { %v653_v29 = vpop.f32.mrb[0].mxu0 }
 0x11f   : > { %v654_v31 = vpop.f32.mrb[1].mxu0 }
 0x120   : > { %v655_v32 = vadd.f32 %v654_v31, %v653_v29  ;;  %v656_v33 = vpop.f32.mrb[2].mxu0 }
 0x121   : > { %v657_v34 = vpop.f32.mrb[3].mxu0 }
 0x122   : > { %v413_v35 = vadd.f32 %v655_v32, %v608_v30 }
 0x124   : > { %v418_v36 = vmul.f32 0.2, %v413_v35 }
 0x126   : > { %v419_v37 = vmax.f32 %v413_v35, %v418_v36 }
 0x128   : > { %v420_v38 = vpack.c.bf16 %v419_v37, %v419_v37 }
 0x12a   : > { %685 = vmatmul.mubr.bf16.vlgmr.msra.gmra.mrb[0].mxu1 %v420_v38 }
 0x1fd   : > { %v526_v40 = vpop.f32.mrb[0].mxu1 }
 0x1fe   : > { %v527_v41 = vadd.f32 %v625_v39, %v526_v40  ;;  %v686_v42 = vpop.f32.mrb[1].mxu1 }
 0x1ff   : > { %v529_v43 = vpop.f32.mrb[2].mxu1 }
 0x200   : > { %532 = vst [vmem:[%s237_s15] sm:$0xff] %v527_v41  ;;  %v687_v44 = vpop.f32.mrb[3].mxu1 }
 0x201 PF: > { %s16_s18 = sadd.s32 1, %s773_s18  }
 0x202   : > { %p13_p3 = scmp.ge.s32.totalorder %s16_s18, 4  }
 0x204   :  { %15 = sbr.rel (!%p13_p3) target bundleno = 1 (0x1), region = 75 }
 0x20b   :  { %552 = vsyncpa [#allocation3], 1 }
 0x20c   :  { %554 = vsyncpa [#allocation3 + $0x1], 1 }

</bundles_post_ra>
